<compile_context>
chip_gen: v7x
topology: tpu7x:2x2x1
jax: 0.10.0
libtpu: 0.0.40
codegen_flags: <defaults>
</compile_context>

<pallas_src>
import jax
import jax.numpy as jnp
from jax.experimental import pallas as pl
from jax.experimental.pallas import tpu as pltpu


# ----------------------------- kernel -----------------------------

def dnn_kernel(x_ref,
               wa_ref, ba_ref,
               wb_ref, bb_ref,
               wc_ref, bc_ref,
               wfc_ref, bfc_ref,
               out_ref):
    cdt = wa_ref.dtype                       # MXU operand dtype (f32 or bf16)
    h = x_ref[...].astype(cdt)               # cast in-kernel (VPU), hidden under the pipeline

    # Layer A: all four branch-entry linears fused -> ReLU (full 128-lane vregs).
    h = jnp.maximum(
        jnp.dot(h, wa_ref[...], preferred_element_type=jnp.float32) + ba_ref[...], 0.0)

    # Layer B: block-diagonal (identity passthrough for branch 1) -> ReLU.
    h = jnp.maximum(
        jnp.dot(h.astype(cdt), wb_ref[...], preferred_element_type=jnp.float32) + bb_ref[...], 0.0)

    # Layer C: block-diagonal (identity for branches 1-3, w43 for branch 4) -> ReLU.
    h = jnp.maximum(
        jnp.dot(h.astype(cdt), wc_ref[...], preferred_element_type=jnp.float32) + bc_ref[...], 0.0)

    # Final fc: (TB, 128) @ (128, 1) + bias.  Lane-sparse store, but writeback is only
    # 4 bytes/row so it is negligible next to the three 128-wide matmuls.
    out_ref[...] = (
        jnp.dot(h.astype(cdt), wfc_ref[...], preferred_element_type=jnp.float32)
        + bfc_ref[...]).astype(out_ref.dtype)


# ----------------------------- wrapper -----------------------------

def _block_diag(*blocks):
    rows = sum(b.shape[0] for b in blocks)
    cols = sum(b.shape[1] for b in blocks)
    out = jnp.zeros((rows, cols), jnp.float32)
    r = c = 0
    for b in blocks:
        out = out.at[r:r + b.shape[0], c:c + b.shape[1]].set(b.astype(jnp.float32))
        r += b.shape[0]
        c += b.shape[1]
    return out


def pack_params(params, compute_dtype=jnp.float32):
    """Fuse the 9 per-branch linears into 4 wide matmul operands. Call ONCE per model."""
    (w1, b1, w21, b21, w22, b22, w31, b31, w32, b32,
     w41, b41, w42, b42, w43, b43, wfc, bfc) = params
    u1 = w1.shape[1]
    u22 = w22.shape[1]
    u32 = w32.shape[1]

    wa = jnp.concatenate([w1, w21, w31, w41], axis=1)
    ba = jnp.concatenate([b1, b21, b31, b41], axis=1)

    wb = _block_diag(jnp.eye(u1, dtype=jnp.float32), w22, w32, w42)
    bb = jnp.concatenate([jnp.zeros((1, u1), jnp.float32), b22, b32, b42], axis=1)

    wc = _block_diag(jnp.eye(u1, dtype=jnp.float32),
                     jnp.eye(u22, dtype=jnp.float32),
                     jnp.eye(u32, dtype=jnp.float32), w43)
    bc = jnp.concatenate([jnp.zeros((1, u1 + u22 + u32), jnp.float32), b43], axis=1)

    cdt = compute_dtype
    # Weights in the MXU dtype; biases stay f32 (added to the f32 accumulator, v5e-friendly).
    return (wa.astype(cdt), ba.astype(jnp.float32),
            wb.astype(cdt), bb.astype(jnp.float32),
            wc.astype(cdt), bc.astype(jnp.float32),
            wfc.astype(cdt), bfc.astype(jnp.float32))


def deep_neural_network(x, packed, *, max_tile=1024):
    """x: (B, x_dim) f32.  packed: output of pack_params().  Returns (B, 1) f32."""
    B, x_dim = x.shape

    # Batch tile: big enough to amortize per-step overhead, multiple of 8 sublanes.
    # Single-block case (B <= max_tile) uses tb = round_up(B, 8) so no pad pass is needed
    # whenever B is already a multiple of 8 (e.g. B = 1000 -> one (1000, x_dim) block).
    if B <= max_tile:
        tb = max(8, ((B + 7) // 8) * 8)
    else:
        tb = max_tile
    b_pad = ((B + tb - 1) // tb) * tb
    if b_pad != B:
        x = jnp.pad(x, ((0, b_pad - B), (0, 0)))   # zero rows: computed then sliced off
    grid = (b_pad // tb,)

    d1, d2, d3 = packed[0].shape[1], packed[2].shape[1], packed[4].shape[1]
    flops = 2 * b_pad * (x_dim * d1 + d1 * d2 + d2 * d3 + d3 * 1)
    bytes_accessed = (x.size * x.dtype.itemsize
                      + sum(int(a.size) * a.dtype.itemsize for a in packed)
                      + b_pad * 4)

    def resident(a):
        # Full-array block, same block index every grid step -> stays in VMEM (no re-DMA).
        return pl.BlockSpec(a.shape, lambda i: (0, 0))

    out = pl.pallas_call(
        dnn_kernel,
        out_shape=jax.ShapeDtypeStruct((b_pad, 1), jnp.float32),
        grid=grid,
        in_specs=[pl.BlockSpec((tb, x_dim), lambda i: (i, 0))]
                 + [resident(a) for a in packed],
        out_specs=pl.BlockSpec((tb, 1), lambda i: (i, 0)),
        compiler_params=pltpu.CompilerParams(
            dimension_semantics=("parallel",)),
        cost_estimate=pl.CostEstimate(flops=flops, transcendentals=0,
                                      bytes_accessed=bytes_accessed),
    )(x, *packed)
    return out[:B]


# ----------------------------- init & reference -----------------------------

def init_params(key, x_dim, u1, u2, u3, u4):
    """nn.Linear-shaped init; weights stored [in, out], biases [1, out]."""
    def linear(k, fan_in, fan_out):
        kw, kb = jax.random.split(k)
        bound = 1.0 / jnp.sqrt(fan_in)
        w = jax.random.uniform(kw, (fan_in, fan_out), jnp.float32, -bound, bound)
        b = jax.random.uniform(kb, (1, fan_out), jnp.float32, -bound, bound)
        return w, b

    cat_dim = u1 + u2[-1] + u3[-1] + u4[-1]
    keys = jax.random.split(key, 9)
    w1, b1 = linear(keys[0], x_dim, u1)
    w21, b21 = linear(keys[1], x_dim, u2[0])
    w22, b22 = linear(keys[2], u2[0], u2[1])
    w31, b31 = linear(keys[3], x_dim, u3[0])
    w32, b32 = linear(keys[4], u3[0], u3[1])
    w41, b41 = linear(keys[5], x_dim, u4[0])
    w42, b42 = linear(keys[6], u4[0], u4[1])
    w43, b43 = linear(keys[7], u4[1], u4[2])
    wfc, bfc = linear(keys[8], cat_dim, 1)
    return (w1, b1, w21, b21, w22, b22, w31, b31, w32, b32,
            w41, b41, w42, b42, w43, b43, wfc, bfc)


def reference_forward(x, params):
    (w1, b1, w21, b21, w22, b22, w31, b31, w32, b32,
     w41, b41, w42, b42, w43, b43, wfc, bfc) = params
    relu = lambda v: jnp.maximum(v, 0.0)
    p1 = relu(x @ w1 + b1)
    p2 = relu(relu(x @ w21 + b21) @ w22 + b22)
    p3 = relu(relu(x @ w31 + b31) @ w32 + b32)
    p4 = relu(relu(relu(x @ w41 + b41) @ w42 + b42) @ w43 + b43)
    h = jnp.concatenate([p1, p2, p3, p4], axis=1)
    return h @ wfc + bfc


# ----------------------------- main -----------------------------

if __name__ == "__main__":
    x_dim = 32
    u1, u2, u3, u4 = 32, (32, 32), (32, 32), (32, 32, 32)
    # Dropout is identity at inference.  TODO(synk): training-mode dropout (pltpu PRNG) not implemented.

    key = jax.random.PRNGKey(0)
    kx, kp, kx2 = jax.random.split(key, 3)
    params = init_params(kp, x_dim, u1, u2, u3, u4)

    # Small batch, f32 MXU operands: must match the unfused reference tightly.
    x = jax.random.normal(kx, (8, x_dim), dtype=jnp.float32)
    packed_f32 = pack_params(params, jnp.float32)
    out = jax.block_until_ready(deep_neural_network(x, packed_f32))
    ref = reference_forward(x, params)
    assert out.shape == (8, 1), out.shape
    assert jnp.allclose(out, ref, atol=1e-4, rtol=1e-4), (out, ref)

    # Larger, non-128-aligned batch: exercises the batch tiling and the bf16 MXU path.
    # B = 1000 is a multiple of 8, so it runs as a single un-padded (1000, 32) block.
    xl = jax.random.normal(kx2, (1000, x_dim), dtype=jnp.float32)
    packed_bf16 = pack_params(params, jnp.bfloat16)
    out_l = jax.block_until_ready(deep_neural_network(xl, packed_bf16, max_tile=1024))
    ref_l = reference_forward(xl, params)
    assert out_l.shape == (1000, 1), out_l.shape
    assert float(jnp.max(jnp.abs(out_l - ref_l))) < 5e-2

    print("KERNEL_OK")
</pallas_src>

<mosaic_0001>
module attributes {stable_mosaic.version = 11 : i64} {
  func.func @dnn_kernel(%arg0: i32, %arg1: memref<8x32xf32, #tpu.memory_space<vmem>>, %arg2: memref<32x128xf32, #tpu.memory_space<vmem>>, %arg3: memref<1x128xf32, #tpu.memory_space<vmem>>, %arg4: memref<128x128xf32, #tpu.memory_space<vmem>>, %arg5: memref<1x128xf32, #tpu.memory_space<vmem>>, %arg6: memref<128x128xf32, #tpu.memory_space<vmem>>, %arg7: memref<1x128xf32, #tpu.memory_space<vmem>>, %arg8: memref<128x1xf32, #tpu.memory_space<vmem>>, %arg9: memref<1x1xf32, #tpu.memory_space<vmem>>, %arg10: memref<8x1xf32, #tpu.memory_space<vmem>>) attributes {dimension_semantics = [#tpu.dimension_semantics<parallel>], iteration_bounds = array<i64: 1>, scalar_prefetch = 0 : i64, scratch_operands = 0 : i64, tpu.core_type = #tpu.core_type<tc>, window_params = [{transform_indices = @transform_0, window_bounds = array<i64: 8, 32>}, {pipeline_mode = #tpu.pipeline_mode<synchronous>, transform_indices = @transform_1, window_bounds = array<i64: 32, 128>}, {pipeline_mode = #tpu.pipeline_mode<synchronous>, transform_indices = @transform_2, window_bounds = array<i64: 1, 128>}, {pipeline_mode = #tpu.pipeline_mode<synchronous>, transform_indices = @transform_3, window_bounds = array<i64: 128, 128>}, {pipeline_mode = #tpu.pipeline_mode<synchronous>, transform_indices = @transform_4, window_bounds = array<i64: 1, 128>}, {pipeline_mode = #tpu.pipeline_mode<synchronous>, transform_indices = @transform_5, window_bounds = array<i64: 128, 128>}, {pipeline_mode = #tpu.pipeline_mode<synchronous>, transform_indices = @transform_6, window_bounds = array<i64: 1, 128>}, {pipeline_mode = #tpu.pipeline_mode<synchronous>, transform_indices = @transform_7, window_bounds = array<i64: 128, 1>}, {pipeline_mode = #tpu.pipeline_mode<synchronous>, transform_indices = @transform_8, window_bounds = array<i64: 1, 1>}, {transform_indices = @transform_9, window_bounds = array<i64: 8, 1>}]} {
    %c0 = arith.constant 0 : index
    %c0_0 = arith.constant 0 : index
    %0 = vector.load %arg1[%c0, %c0_0] : memref<8x32xf32, #tpu.memory_space<vmem>>, vector<8x32xf32>
    %c0_1 = arith.constant 0 : index
    %c0_2 = arith.constant 0 : index
    %1 = vector.load %arg2[%c0_1, %c0_2] : memref<32x128xf32, #tpu.memory_space<vmem>>, vector<32x128xf32>
    %cst = arith.constant dense<0.000000e+00> : vector<8x128xf32>
    %2 = tpu.matmul %0, %1, %cst {dimension_numbers = #tpu.dot_dimension_numbers<[1], [0], [0], [1], [0, 0, 1, 1], [], []>} : vector<8x32xf32>, vector<32x128xf32>, vector<8x128xf32> -> vector<8x128xf32>
    %c0_3 = arith.constant 0 : index
    %c0_4 = arith.constant 0 : index
    %3 = vector.load %arg3[%c0_3, %c0_4] : memref<1x128xf32, #tpu.memory_space<vmem>>, vector<1x128xf32>
    %4 = vector.broadcast %3 : vector<1x128xf32> to vector<8x128xf32>
    %5 = arith.addf %2, %4 : vector<8x128xf32>
    %cst_5 = arith.constant 0.000000e+00 : f32
    %6 = vector.broadcast %cst_5 : f32 to vector<8x128xf32>
    %7 = arith.maximumf %5, %6 : vector<8x128xf32>
    %c0_6 = arith.constant 0 : index
    %c0_7 = arith.constant 0 : index
    %8 = vector.load %arg4[%c0_6, %c0_7] : memref<128x128xf32, #tpu.memory_space<vmem>>, vector<128x128xf32>
    %cst_8 = arith.constant dense<0.000000e+00> : vector<8x128xf32>
    %9 = tpu.matmul %7, %8, %cst_8 {dimension_numbers = #tpu.dot_dimension_numbers<[1], [0], [0], [1], [0, 0, 1, 1], [], []>} : vector<8x128xf32>, vector<128x128xf32>, vector<8x128xf32> -> vector<8x128xf32>
    %c0_9 = arith.constant 0 : index
    %c0_10 = arith.constant 0 : index
    %10 = vector.load %arg5[%c0_9, %c0_10] : memref<1x128xf32, #tpu.memory_space<vmem>>, vector<1x128xf32>
    %11 = vector.broadcast %10 : vector<1x128xf32> to vector<8x128xf32>
    %12 = arith.addf %9, %11 : vector<8x128xf32>
    %cst_11 = arith.constant 0.000000e+00 : f32
    %13 = vector.broadcast %cst_11 : f32 to vector<8x128xf32>
    %14 = arith.maximumf %12, %13 : vector<8x128xf32>
    %c0_12 = arith.constant 0 : index
    %c0_13 = arith.constant 0 : index
    %15 = vector.load %arg6[%c0_12, %c0_13] : memref<128x128xf32, #tpu.memory_space<vmem>>, vector<128x128xf32>
    %cst_14 = arith.constant dense<0.000000e+00> : vector<8x128xf32>
    %16 = tpu.matmul %14, %15, %cst_14 {dimension_numbers = #tpu.dot_dimension_numbers<[1], [0], [0], [1], [0, 0, 1, 1], [], []>} : vector<8x128xf32>, vector<128x128xf32>, vector<8x128xf32> -> vector<8x128xf32>
    %c0_15 = arith.constant 0 : index
    %c0_16 = arith.constant 0 : index
    %17 = vector.load %arg7[%c0_15, %c0_16] : memref<1x128xf32, #tpu.memory_space<vmem>>, vector<1x128xf32>
    %18 = vector.broadcast %17 : vector<1x128xf32> to vector<8x128xf32>
    %19 = arith.addf %16, %18 : vector<8x128xf32>
    %cst_17 = arith.constant 0.000000e+00 : f32
    %20 = vector.broadcast %cst_17 : f32 to vector<8x128xf32>
    %21 = arith.maximumf %19, %20 : vector<8x128xf32>
    %c0_18 = arith.constant 0 : index
    %c0_19 = arith.constant 0 : index
    %22 = vector.load %arg8[%c0_18, %c0_19] : memref<128x1xf32, #tpu.memory_space<vmem>>, vector<128x1xf32>
    %cst_20 = arith.constant dense<0.000000e+00> : vector<8x1xf32>
    %23 = tpu.matmul %21, %22, %cst_20 {dimension_numbers = #tpu.dot_dimension_numbers<[1], [0], [0], [1], [0, 0, 1, 1], [], []>} : vector<8x128xf32>, vector<128x1xf32>, vector<8x1xf32> -> vector<8x1xf32>
    %c0_21 = arith.constant 0 : index
    %c0_22 = arith.constant 0 : index
    %24 = vector.load %arg9[%c0_21, %c0_22] : memref<1x1xf32, #tpu.memory_space<vmem>>, vector<1x1xf32>
    %25 = vector.broadcast %24 : vector<1x1xf32> to vector<8x1xf32>
    %26 = arith.addf %23, %25 : vector<8x1xf32>
    %c0_23 = arith.constant 0 : index
    %c0_24 = arith.constant 0 : index
    %27 = vector.load %arg10[%c0_23, %c0_24] : memref<8x1xf32, #tpu.memory_space<vmem>>, vector<8x1xf32>
    tpu.vector_store %arg10[%c0_23, %c0_24], %26 {strides = array<i32>} : memref<8x1xf32, #tpu.memory_space<vmem>>, vector<8x1xf32>,
    return
  }
  func.func @transform_0(%arg0: i32) -> (i32, i32) {
    %c0_i32 = arith.constant 0 : i32
    %c0_i32_0 = arith.constant 0 : i32
    return %arg0, %c0_i32 : i32, i32
  }
  func.func @transform_1(%arg0: i32) -> (i32, i32) {
    %c0_i32 = arith.constant 0 : i32
    %c0_i32_0 = arith.constant 0 : i32
    %c0_i32_1 = arith.constant 0 : i32
    return %c0_i32, %c0_i32_0 : i32, i32
  }
  func.func @transform_2(%arg0: i32) -> (i32, i32) {
    %c0_i32 = arith.constant 0 : i32
    %c0_i32_0 = arith.constant 0 : i32
    %c0_i32_1 = arith.constant 0 : i32
    return %c0_i32, %c0_i32_0 : i32, i32
  }
  func.func @transform_3(%arg0: i32) -> (i32, i32) {
    %c0_i32 = arith.constant 0 : i32
    %c0_i32_0 = arith.constant 0 : i32
    %c0_i32_1 = arith.constant 0 : i32
    return %c0_i32, %c0_i32_0 : i32, i32
  }
  func.func @transform_4(%arg0: i32) -> (i32, i32) {
    %c0_i32 = arith.constant 0 : i32
    %c0_i32_0 = arith.constant 0 : i32
    %c0_i32_1 = arith.constant 0 : i32
    return %c0_i32, %c0_i32_0 : i32, i32
  }
  func.func @transform_5(%arg0: i32) -> (i32, i32) {
    %c0_i32 = arith.constant 0 : i32
    %c0_i32_0 = arith.constant 0 : i32
    %c0_i32_1 = arith.constant 0 : i32
    return %c0_i32, %c0_i32_0 : i32, i32
  }
  func.func @transform_6(%arg0: i32) -> (i32, i32) {
    %c0_i32 = arith.constant 0 : i32
    %c0_i32_0 = arith.constant 0 : i32
    %c0_i32_1 = arith.constant 0 : i32
    return %c0_i32, %c0_i32_0 : i32, i32
  }
  func.func @transform_7(%arg0: i32) -> (i32, i32) {
    %c0_i32 = arith.constant 0 : i32
    %c0_i32_0 = arith.constant 0 : i32
    %c0_i32_1 = arith.constant 0 : i32
    return %c0_i32, %c0_i32_0 : i32, i32
  }
  func.func @transform_8(%arg0: i32) -> (i32, i32) {
    %c0_i32 = arith.constant 0 : i32
    %c0_i32_0 = arith.constant 0 : i32
    %c0_i32_1 = arith.constant 0 : i32
    return %c0_i32, %c0_i32_0 : i32, i32
  }
  func.func @transform_9(%arg0: i32) -> (i32, i32) {
    %c0_i32 = arith.constant 0 : i32
    %c0_i32_0 = arith.constant 0 : i32
    return %arg0, %c0_i32 : i32, i32
  }
}

</mosaic_0001>

<bundles_post_ra>
// kernel: tpu_custom_call.1
= control target key start
LH: loop header
LB: loop body
LE: loop exit
PB: predicated region body
PF: predicated region fallthrough
CT: control target
= control target key end

     0   :  { %s977_s0 = inlined_call_operand.vmem [shape: f32[8,32], index: 0, kind: input, shape index: {}]   ;;  %s978_s1 = inlined_call_operand.hbm [shape: f32[32,128], index: 1, kind: input, shape index: {}]   ;;  %s979_s2 = inlined_call_operand.vmem [shape: f32[1,128], index: 2, kind: input, shape index: {}]   ;;  %s980_s3 = inlined_call_operand.vmem [shape: f32[128,128], index: 3, kind: input, shape index: {}]   ;;  %s981_s4 = inlined_call_operand.vmem [shape: f32[1,128], index: 4, kind: input, shape index: {}]   ;;  %s982_s5 = inlined_call_operand.hbm [shape: f32[128,128], index: 5, kind: input, shape index: {}]   ;;  %s983_s6 = inlined_call_operand.vmem [shape: f32[1,128], index: 6, kind: input, shape index: {}]   ;;  %s984_s7 = inlined_call_operand.vmem [shape: f32[128,1], index: 7, kind: input, shape index: {}]   ;;  %s985_s8 = inlined_call_operand.<no memory space> [shape: f32[1,1], index: 8, kind: input, shape index: {}]   ;;  %s986_s9 = inlined_call_operand.vmem [shape: f32[8,1], index: 9, kind: output, shape index: {}]  }
   0x1   :  { %v14_v0 = vstv %s985_s8 }
   0x2   :  { %15 = vst [vmem:[#allocation2] sm:$0x1] %v14_v0 }
   0x3   :  { %16 = vsyncpa [#allocation4], 0 }
   0x4   :  { %17 = vsyncpa [#allocation6], 0  ;;  %s748_s11 = smov [#allocation3]   ;;  %s700_s15 = scalar_lea.hbm %s978_s1, 512 }
   0x5   :  { %s25_s12 = sshll.u32 %s748_s11, 4  ;;  %p701_p0 = scmp.ne.s32.totalorder %s978_s1, %s700_s15  ;;  %s26_s12 = int_to_ptr.vmem [resolvable:$true] %s25_s12 }
   0x6   :  { %p704_p1 = scmp.lt.u32.totalorder %s700_s15, %s978_s1 }
   0x8   :  { %p706_p2 = pnand %p704_p1, %p701_p0 }
   0xa   :  { %709 = shalt.err (!%p706_p2)
}
   0xb   :  { %s710_s8 = scalar_lea.vmem %s26_s12, 512  ;;  %p715_p4 = scmp.lt.s32.totalorder %s26_s12, %s26_s12 }
   0xc   :  { %p711_p3 = scmp.ne.s32.totalorder %s26_s12, %s710_s8  ;;  %p716_p5 = scmp.lt.s32.totalorder %s710_s8, %s710_s8 }
   0xe   :  { %p717_p6 = por %p716_p5, %p715_p4 }
  0x10   :  { %p718_p7 = pnand %p717_p6, %p711_p3 }
  0x12   :  { %721 = shalt.err (!%p718_p7)
}
  0x13   :  { %s749_s20 = smov 128   ;;  %s750_s21 = smov 8  }
  0x14   :  { %31 = dma.hbm_to_vmem [thread:$0]  %s978_s1, 512, %s26_s12, [#allocation4], %s749_s20, %s749_s20, %s750_s21  }
  0x15   :  { %s751_s24 = smov [#allocation5]   ;;  %s722_s28 = scalar_lea.hbm %s982_s5, 2048 }
  0x16   :  { %s43_s25 = sshll.u32 %s751_s24, 4  ;;  %p723_p8 = scmp.ne.s32.totalorder %s982_s5, %s722_s28  ;;  %s44_s25 = int_to_ptr.vmem [resolvable:$true] %s43_s25 }
  0x17   :  { %p726_p9 = scmp.lt.u32.totalorder %s722_s28, %s982_s5 }
  0x19   :  { %p728_p10 = pnand %p726_p9, %p723_p8 }
  0x1b   :  { %731 = shalt.err (!%p728_p10)
}
  0x1c   :  { %s732_s13 = scalar_lea.vmem %s44_s25, 2048  ;;  %p737_p12 = scmp.lt.s32.totalorder %s44_s25, %s44_s25 }
  0x1d   :  { %p733_p11 = scmp.ne.s32.totalorder %s44_s25, %s732_s13  ;;  %p738_p13 = scmp.lt.s32.totalorder %s732_s13, %s732_s13 }
  0x1f   :  { %p739_p0 = por %p738_p13, %p737_p12 }
  0x21   :  { %p740_p1 = pnand %p739_p0, %p733_p11 }
  0x23   :  { %743 = shalt.err (!%p740_p1)
}
  0x24   :  { %49 = dma.hbm_to_vmem [thread:$0]  %s982_s5, 2048, %s44_s25, [#allocation6], %s749_s20, %s749_s20, %s750_s21  }
  0x25   :  { %744 = dma.done.wait [#allocation4], 512  }
  0x26   :  { %745 = vsyncadd [#allocation4], 4294966784 }
  0x27   :  { %746 = dma.done.wait [#allocation6], 2048  }
  0x28   :  { %747 = vsyncadd [#allocation6], 4294965248  ;;  %v752_v1 = vmov 0.0|0.0   ;;  %vm753_vm0 = vmmov 0   ;;  %v754_v2 = vmov 0.0   ;;  %v63_v3 = vld [vmem:[#allocation3] sm:$0xff] }
  0x29   :  { %615 = vmatprep.subr.bf16.mxu0 %v752_v1  ;;  %507 = vmatprep.mubr.msk.f32.mxu0 %vm753_vm0, %v754_v2  ;;  %v64_v4 = vld [vmem:[#allocation3 + $0x8] sm:$0xff]  ;;  %v65_v5 = vld [vmem:[#allocation3 + $0x10] sm:$0xff]  ;;  %v66_v7 = vld [vmem:[#allocation3 + $0x18] sm:$0xff]  ;;  %vm74_vm1 = vcmask 261120   ;;  %vm430_vm2 = vcmask 7168  }
  0x2a   :  { %621 = vmatprep.subr.bf16.mxu1 %v752_v1  ;;  %542 = vmatprep.mubr.msk.f32.mxu1 %vm753_vm0, %v754_v2  ;;  %v616_v6 = vpack.c.bf16 %v64_v4, %v63_v3  ;;  %v149_v8 = vld [vmem:[%s980_s3] sm:$0xff]  ;;  %v150_v9 = vld [vmem:[%s980_s3 + $0x8] sm:$0xff]  ;;  %v151_v10 = vld [vmem:[%s980_s3 + $0x10] sm:$0xff]  ;;  %v619_v12 = vpack.c.bf16 %v66_v7, %v65_v5 }
  0x2b   :  { %v152_v11 = vld [vmem:[%s980_s3 + $0x18] sm:$0xff]  ;;  %v622_v13 = vpack.c.bf16 %v150_v9, %v149_v8  ;;  %v153_v15 = vld [vmem:[%s980_s3 + $0x20] sm:$0xff]  ;;  %v154_v16 = vld [vmem:[%s980_s3 + $0x28] sm:$0xff] }
  0x2c   :  { %617 = vmatpush3.bf16.msra.mxu0 %v616_v6  ;;  %v625_v14 = vpack.c.bf16 %v152_v11, %v151_v10  ;;  %v62_v17 = vld [vmem:[%s977_s0] sm:$0xff]  ;;  %v628_v18 = vpack.c.bf16 %v154_v16, %v153_v15  ;;  %v155_v19 = vld [vmem:[%s980_s3 + $0x30] sm:$0xff]  ;;  %v156_v20 = vld [vmem:[%s980_s3 + $0x38] sm:$0xff] }
  0x2d   :  { %618 = vmatprep.subr.bf16.mxu0 %v752_v1  ;;  %623 = vmatpush3.bf16.msra.mxu1 %v622_v13  ;;  %v631_v21 = vpack.c.bf16 %v156_v20, %v155_v19  ;;  %v157_v22 = vld [vmem:[%s980_s3 + $0x40] sm:$0xff]  ;;  %v158_v23 = vld [vmem:[%s980_s3 + $0x48] sm:$0xff]  ;;  %v159_v25 = vld [vmem:[%s980_s3 + $0x50] sm:$0xff] }
  0x2e   :  { %624 = vmatprep.subr.bf16.mxu1 %v752_v1  ;;  %v634_v24 = vpack.c.bf16 %v158_v23, %v157_v22  ;;  %v160_v26 = vld [vmem:[%s980_s3 + $0x58] sm:$0xff]  ;;  %v161_v28 = vld [vmem:[%s980_s3 + $0x60] sm:$0xff]  ;;  %v162_v29 = vld [vmem:[%s980_s3 + $0x68] sm:$0xff] }
  0x2f   :  { %v637_v27 = vpack.c.bf16 %v160_v26, %v159_v25  ;;  %v640_v30 = vpack.c.bf16 %v162_v29, %v161_v28  ;;  %v163_v31 = vld [vmem:[%s980_s3 + $0x70] sm:$0xff]  ;;  %v164_v32 = vld [vmem:[%s980_s3 + $0x78] sm:$0xff]  ;;  %v243_v34 = vld [vmem:[#allocation5] sm:$0xff] }
  0x30   :  { %620 = vmatpush3.bf16.msra.mxu0 %v619_v12  ;;  %v643_v33 = vpack.c.bf16 %v164_v32, %v163_v31  ;;  %v244_v35 = vld [vmem:[#allocation5 + $0x8] sm:$0xff]  ;;  %v245_v36 = vld [vmem:[#allocation5 + $0x10] sm:$0xff]  ;;  %v246_v38 = vld [vmem:[#allocation5 + $0x18] sm:$0xff] }
  0x31   :  { %645 = vmatprep.subr.bf16.mxu0 %v752_v1  ;;  %626 = vmatpush3.bf16.msra.mxu1 %v625_v14  ;;  %v646_v37 = vpack.c.bf16 %v244_v35, %v243_v34  ;;  %v649_v39 = vpack.c.bf16 %v246_v38, %v245_v36  ;;  %v247_v40 = vld [vmem:[#allocation5 + $0x20] sm:$0xff]  ;;  %v248_v41 = vld [vmem:[#allocation5 + $0x28] sm:$0xff]  ;;  %v249_v43 = vld [vmem:[#allocation5 + $0x30] sm:$0xff] }
  0x32   :  { %627 = vmatprep.subr.bf16.mxu1 %v752_v1  ;;  %v652_v42 = vpack.c.bf16 %v248_v41, %v247_v40  ;;  %v250_v44 = vld [vmem:[#allocation5 + $0x38] sm:$0xff]  ;;  %v251_v46 = vld [vmem:[#allocation5 + $0x40] sm:$0xff]  ;;  %v252_v47 = vld [vmem:[#allocation5 + $0x48] sm:$0xff] }
  0x33   :  { %508 = vmatmul.mubr.msk.f32.vlgmr.msra.gmra.mrb[0].mxu0 %vm74_vm1, %v62_v17  ;;  %v655_v45 = vpack.c.bf16 %v250_v44, %v249_v43  ;;  %v658_v48 = vpack.c.bf16 %v252_v47, %v251_v46  ;;  %v253_v49 = vld [vmem:[#allocation5 + $0x50] sm:$0xff]  ;;  %v254_v50 = vld [vmem:[#allocation5 + $0x58] sm:$0xff]  ;;  %v255_v52 = vld [vmem:[#allocation5 + $0x60] sm:$0xff] }
  0x34   :  { %577 = vmatprep.mubr.msk.f32.mxu0 %vm753_vm0, %v754_v2  ;;  %647 = vmatpush3.bf16.msra.mxu0 %v646_v37  ;;  %v661_v51 = vpack.c.bf16 %v254_v50, %v253_v49  ;;  %v256_v53 = vld [vmem:[#allocation5 + $0x68] sm:$0xff]  ;;  %v438_v55 = vld [vmem:[%s979_s2] ss:$0 sm:$0xff]  ;;  %v257_v60 = vld [vmem:[#allocation5 + $0x70] sm:$0xff] }
  0x35   :  { %629 = vmatpush3.bf16.msra.mxu1 %v628_v18  ;;  %648 = vmatprep.subr.bf16.mxu0 %v752_v1  ;;  %v664_v54 = vpack.c.bf16 %v256_v53, %v255_v52  ;;  %v258_v61 = vld [vmem:[#allocation5 + $0x78] sm:$0xff]  ;;  %v338_v0 = vld [vmem:[%s984_s7 + $0x8] sm:$0xff]  ;;  %v339_v3 = vld [vmem:[%s984_s7 + $0x10] sm:$0xff] }
  0x36   :  { %630 = vmatprep.subr.bf16.mxu1 %v752_v1  ;;  %v667_v62 = vpack.c.bf16 %v258_v61, %v257_v60  ;;  %v337_v63 = vld [vmem:[%s984_s7] sm:$0xff]  ;;  %v342_v7 = vld [vmem:[%s984_s7 + $0x28] sm:$0xff]  ;;  %v343_v9 = vld [vmem:[%s984_s7 + $0x30] sm:$0xff] }
  0x37   :  { %v670_v4 = vpack.c.bf16 %v338_v0, %v337_v63  ;;  %v341_v6 = vld [vmem:[%s984_s7 + $0x20] sm:$0xff]  ;;  %v344_v10 = vld [vmem:[%s984_s7 + $0x38] sm:$0xff]  ;;  %v346_v13 = vld [vmem:[%s984_s7 + $0x48] sm:$0xff] }
  0x38   :  { %650 = vmatpush3.bf16.msra.mxu0 %v649_v39  ;;  %v676_v8 = vpack.c.bf16 %v342_v7, %v341_v6  ;;  %v679_v11 = vpack.c.bf16 %v344_v10, %v343_v9  ;;  %v345_v12 = vld [vmem:[%s984_s7 + $0x40] sm:$0xff]  ;;  %v347_v15 = vld [vmem:[%s984_s7 + $0x50] sm:$0xff]  ;;  %v348_v16 = vld [vmem:[%s984_s7 + $0x58] sm:$0xff] }
  0x39   :  { %632 = vmatpush3.bf16.msra.mxu1 %v631_v21  ;;  %651 = vmatprep.subr.bf16.mxu0 %v752_v1  ;;  %v682_v14 = vpack.c.bf16 %v346_v13, %v345_v12  ;;  %v685_v17 = vpack.c.bf16 %v348_v16, %v347_v15  ;;  %v349_v18 = vld [vmem:[%s984_s7 + $0x60] sm:$0xff]  ;;  %v350_v19 = vld [vmem:[%s984_s7 + $0x68] sm:$0xff]  ;;  %v351_v26 = vld [vmem:[%s984_s7 + $0x70] sm:$0xff] }
  0x3a   :  { %633 = vmatprep.subr.bf16.mxu1 %v752_v1  ;;  %v688_v20 = vpack.c.bf16 %v350_v19, %v349_v18  ;;  %v440_v21 = vld [vmem:[%s981_s4] ss:$0 sm:$0xff] }
  0x3c   :  { %653 = vmatpush3.bf16.msra.mxu0 %v652_v42 }
  0x3d   :  { %635 = vmatpush3.bf16.msra.mxu1 %v634_v24  ;;  %654 = vmatprep.subr.bf16.mxu0 %v752_v1 }
  0x3e   :  { %636 = vmatprep.subr.bf16.mxu1 %v752_v1 }
  0x40   :  { %656 = vmatpush3.bf16.msra.mxu0 %v655_v45 }
  0x41   :  { %638 = vmatpush3.bf16.msra.mxu1 %v637_v27  ;;  %657 = vmatprep.subr.bf16.mxu0 %v752_v1  ;;  %v352_v27 = vld [vmem:[%s984_s7 + $0x78] sm:$0xff] }
  0x42   :  { %639 = vmatprep.subr.bf16.mxu1 %v752_v1  ;;  %v691_v28 = vpack.c.bf16 %v352_v27, %v351_v26 }
  0x44   :  { %659 = vmatpush3.bf16.msra.mxu0 %v658_v48 }
  0x45   :  { %641 = vmatpush3.bf16.msra.mxu1 %v640_v30  ;;  %660 = vmatprep.subr.bf16.mxu0 %v752_v1 }
  0x46   :  { %642 = vmatprep.subr.bf16.mxu1 %v752_v1 }
  0x48   :  { %662 = vmatpush3.bf16.msra.mxu0 %v661_v51 }
  0x49   :  { %644 = vmatpush3.bf16.msra.mxu1 %v643_v33  ;;  %663 = vmatprep.subr.bf16.mxu0 %v752_v1  ;;  %v442_v33 = vld [vmem:[#allocation2] ss:$0 sm:$0xff] }
  0x4a   :  { %669 = vmatprep.subr.bf16.mxu1 %v752_v1 }
  0x4c   :  { %665 = vmatpush3.bf16.msra.mxu0 %v664_v54 }
  0x4d   :  { %666 = vmatprep.subr.bf16.mxu0 %v752_v1 }
  0x50   :  { %668 = vmatpush3.bf16.msra.mxu0 %v667_v62 }
 0x106   :  { %v144_v56 = vpop.f32.mrb[0].mxu0 }
 0x107   :  { %v145_v57 = vadd.f32 %v438_v55, %v144_v56  ;;  %v509_v58 = vpop.f32.mrb[1].mxu0 }
 0x109   :  { %v148_v59 = vmax.f32 %v145_v57, 0.0 }
 0x10b   :  { %543 = vmatmul.mubr.f32.vlgmr.msra.gmra.mrb[0].mxu1 %v148_v59 }
 0x10c   :  { %612 = vmatprep.mubr.msk.f32.mxu1 %vm753_vm0, %v754_v2  ;;  %v340_v2 = vld [vmem:[%s984_s7 + $0x18] sm:$0xff]  ;;  %671 = vmatpush3.bf16.msra.mxu1 %v670_v4 }
 0x10d   :  { %v673_v5 = vpack.c.bf16 %v340_v2, %v339_v3  ;;  %672 = vmatprep.subr.bf16.mxu1 %v752_v1 }
 0x110   :  { %674 = vmatpush3.bf16.msra.mxu1 %v673_v5 }
 0x111   :  { %675 = vmatprep.subr.bf16.mxu1 %v752_v1 }
 0x114   :  { %677 = vmatpush3.bf16.msra.mxu1 %v676_v8 }
 0x115   :  { %678 = vmatprep.subr.bf16.mxu1 %v752_v1 }
 0x118   :  { %680 = vmatpush3.bf16.msra.mxu1 %v679_v11 }
 0x119   :  { %681 = vmatprep.subr.bf16.mxu1 %v752_v1 }
 0x11c   :  { %683 = vmatpush3.bf16.msra.mxu1 %v682_v14 }
 0x11d   :  { %684 = vmatprep.subr.bf16.mxu1 %v752_v1 }
 0x120   :  { %686 = vmatpush3.bf16.msra.mxu1 %v685_v17 }
 0x121   :  { %687 = vmatprep.subr.bf16.mxu1 %v752_v1 }
 0x124   :  { %689 = vmatpush3.bf16.msra.mxu1 %v688_v20 }
 0x125   :  { %690 = vmatprep.subr.bf16.mxu1 %v752_v1  ;;  %v441_v1 = vld [vmem:[%s983_s6] ss:$0 sm:$0xff] }
 0x128   :  { %692 = vmatpush3.bf16.msra.mxu1 %v691_v28 }
 0x1de   :  { %v238_v22 = vpop.f32.mrb[0].mxu1 }
 0x1df   :  { %v239_v23 = vadd.f32 %v440_v21, %v238_v22  ;;  %v544_v24 = vpop.f32.mrb[1].mxu1 }
 0x1e1   :  { %v242_v25 = vmax.f32 %v239_v23, 0.0 }
 0x1e3   :  { %578 = vmatmul.mubr.f32.vlgmr.msra.gmra.mrb[2].mxu0 %v242_v25 }
 0x2b6   :  { %v332_v29 = vpop.f32.mrb[2].mxu0 }
 0x2b7   :  { %v333_v30 = vadd.f32 %v441_v1, %v332_v29  ;;  %v579_v31 = vpop.f32.mrb[3].mxu0 }
 0x2b9   :  { %v336_v32 = vmax.f32 %v333_v30, 0.0 }
 0x2bb   :  { %613 = vmatmul.mubr.f32.vlgmr.msra.gmra.mrb[2].mxu1 %v336_v32 }
 0x38e   :  { %v426_v34 = vpop.f32.mrb[2].mxu1 }
 0x38f   :  { %v427_v35 = vadd.f32 %v442_v33, %v426_v34  ;;  %v614_v36 = vpop.f32.mrb[3].mxu1 }
 0x391   :  { %431 = vst.msk [vmem:[%s986_s9] sm:$0xff] %vm430_vm2, %v427_v35 }
 0x392   :  { %436 = vsyncpa [#allocation4], 1 }
 0x393   :  { %437 = vsyncpa [#allocation6], 1 }

</bundles_post_ra>
